<compile_context>
chip_gen: v5e
topology: v5e:2x2
jax: 0.10.0
libtpu: 0.0.40
codegen_flags: <defaults>
</compile_context>

<pallas_src>
import jax
import jax.numpy as jnp
from jax.experimental import pallas as pl
from jax.experimental.pallas import tpu as pltpu  # noqa: F401  (TPU backend)


def _moe_mask_kernel(idx_ref, table_ref, out_ref):
    # idx_ref:   [B, 1] int32   (VMEM)
    # table_ref: [T, E] float32 (VMEM)
    # out_ref:   [B, E] float32 (VMEM)  -- row b = table[idx[b], :]
    idx = idx_ref[...]                                  # [B, 1]
    T = table_ref.shape[0]

    # T-step unrolled compare/select on the VPU (no MXU, no one-hot build).
    # Out-of-range / negative indices produce an all-zero row (documented
    # divergence from torch advanced indexing, same as previous version).
    acc = jnp.zeros(out_ref.shape, dtype=out_ref.dtype)  # [B, E]
    for t in range(T):
        row = table_ref[t:t + 1, :]                      # [1, E] static slice
        acc = jnp.where(idx == t, row, acc)              # bcast -> [B, E]
    out_ref[...] = acc


def mixture_of_experts_mask(task_index, task_index_to_mask):
    """JAX/Pallas equivalent of MixtureOfExperts.forward.

    Args:
      task_index: int array of shape [B] or [B, 1] (or scalar).
      task_index_to_mask: float array of shape [num_tasks, num_experts].
    Returns:
      float array of shape [num_experts, B, 1].
    """
    # torch: task_index.squeeze(), re-adding the batch dim if it collapsed.
    idx = jnp.reshape(task_index, (-1, 1)).astype(jnp.int32)     # [B, 1]
    B = idx.shape[0]
    T, E = task_index_to_mask.shape
    table = task_index_to_mask.astype(jnp.float32)

    cost = pl.CostEstimate(
        flops=2 * B * T * E,
        transcendentals=0,
        bytes_accessed=idx.size * 4 + table.size * 4 + B * E * 4,
    )

    mask_be = pl.pallas_call(
        _moe_mask_kernel,
        out_shape=jax.ShapeDtypeStruct((B, E), jnp.float32),
        in_specs=[
            pl.BlockSpec((B, 1), lambda: (0, 0)),
            pl.BlockSpec((T, E), lambda: (0, 0)),
        ],
        out_specs=pl.BlockSpec((B, E), lambda: (0, 0)),
        cost_estimate=cost,
    )(idx, table)

    # .t().unsqueeze(2): [B, E] -> [E, B, 1]   (layout plumbing outside kernel)
    return jnp.transpose(mask_be)[:, :, None]


def _reference(task_index, task_index_to_mask):
    idx = jnp.reshape(task_index, (-1,))
    m = task_index_to_mask[idx]              # [B, E]
    return jnp.transpose(m)[:, :, None]      # [E, B, 1]


if __name__ == "__main__":
    key = jax.random.PRNGKey(0)
    num_tasks = 10
    num_experts = 4
    batch = 8

    # Deterministic synthetic "task -> expert" binary mask table.
    k_table, k_idx = jax.random.split(key)
    task_index_to_mask = jax.random.bernoulli(
        k_table, p=0.5, shape=(num_tasks, num_experts)).astype(jnp.float32)

    # task_index as in the torch module: integer task ids, shape [B, 1].
    task_index = jax.random.randint(
        k_idx, shape=(batch, 1), minval=0, maxval=num_tasks, dtype=jnp.int32)

    out = mixture_of_experts_mask(task_index, task_index_to_mask)
    out = jax.block_until_ready(out)

    ref = _reference(task_index, task_index_to_mask)
    assert out.shape == (num_experts, batch, 1), out.shape
    assert jnp.allclose(out, ref), "mismatch vs reference gather"

    print("KERNEL_OK")
</pallas_src>

<mosaic_0001>
module attributes {stable_mosaic.version = 11 : i64} {
  func.func @_moe_mask_kernel(%arg0: memref<8x1xi32, #tpu.memory_space<vmem>>, %arg1: memref<10x4xf32, #tpu.memory_space<vmem>>, %arg2: memref<8x4xf32, #tpu.memory_space<vmem>>) attributes {dimension_semantics = [], scalar_prefetch = 0 : i64, scratch_operands = 0 : i64, tpu.core_type = #tpu.core_type<tc>} {
    %c0 = arith.constant 0 : index
    %c0_0 = arith.constant 0 : index
    %0 = vector.load %arg0[%c0, %c0_0] : memref<8x1xi32, #tpu.memory_space<vmem>>, vector<8x1xi32>
    %cst = arith.constant 0.000000e+00 : f32
    %1 = vector.broadcast %cst : f32 to vector<8x4xf32>
    %c0_1 = arith.constant 0 : index
    %c0_2 = arith.constant 0 : index
    %2 = vector.load %arg1[%c0_1, %c0_2] : memref<10x4xf32, #tpu.memory_space<vmem>>, vector<1x4xf32>
    %c0_i32 = arith.constant 0 : i32
    %3 = vector.broadcast %c0_i32 : i32 to vector<8x1xi32>
    %4 = arith.cmpi eq, %0, %3 : vector<8x1xi32>
    %5 = vector.shape_cast %4 : vector<8x1xi1> to vector<8x1xi1>
    %6 = vector.broadcast %5 : vector<8x1xi1> to vector<8x4xi1>
    %7 = vector.shape_cast %2 : vector<1x4xf32> to vector<1x4xf32>
    %8 = vector.broadcast %7 : vector<1x4xf32> to vector<8x4xf32>
    %9 = arith.select %6, %8, %1 : vector<8x4xi1>, vector<8x4xf32>
    %c1 = arith.constant 1 : index
    %c0_3 = arith.constant 0 : index
    %10 = vector.load %arg1[%c1, %c0_3] : memref<10x4xf32, #tpu.memory_space<vmem>>, vector<1x4xf32>
    %c1_i32 = arith.constant 1 : i32
    %11 = vector.broadcast %c1_i32 : i32 to vector<8x1xi32>
    %12 = arith.cmpi eq, %0, %11 : vector<8x1xi32>
    %13 = vector.shape_cast %12 : vector<8x1xi1> to vector<8x1xi1>
    %14 = vector.broadcast %13 : vector<8x1xi1> to vector<8x4xi1>
    %15 = vector.shape_cast %10 : vector<1x4xf32> to vector<1x4xf32>
    %16 = vector.broadcast %15 : vector<1x4xf32> to vector<8x4xf32>
    %17 = arith.select %14, %16, %9 : vector<8x4xi1>, vector<8x4xf32>
    %c2 = arith.constant 2 : index
    %c0_4 = arith.constant 0 : index
    %18 = vector.load %arg1[%c2, %c0_4] : memref<10x4xf32, #tpu.memory_space<vmem>>, vector<1x4xf32>
    %c2_i32 = arith.constant 2 : i32
    %19 = vector.broadcast %c2_i32 : i32 to vector<8x1xi32>
    %20 = arith.cmpi eq, %0, %19 : vector<8x1xi32>
    %21 = vector.shape_cast %20 : vector<8x1xi1> to vector<8x1xi1>
    %22 = vector.broadcast %21 : vector<8x1xi1> to vector<8x4xi1>
    %23 = vector.shape_cast %18 : vector<1x4xf32> to vector<1x4xf32>
    %24 = vector.broadcast %23 : vector<1x4xf32> to vector<8x4xf32>
    %25 = arith.select %22, %24, %17 : vector<8x4xi1>, vector<8x4xf32>
    %c3 = arith.constant 3 : index
    %c0_5 = arith.constant 0 : index
    %26 = vector.load %arg1[%c3, %c0_5] : memref<10x4xf32, #tpu.memory_space<vmem>>, vector<1x4xf32>
    %c3_i32 = arith.constant 3 : i32
    %27 = vector.broadcast %c3_i32 : i32 to vector<8x1xi32>
    %28 = arith.cmpi eq, %0, %27 : vector<8x1xi32>
    %29 = vector.shape_cast %28 : vector<8x1xi1> to vector<8x1xi1>
    %30 = vector.broadcast %29 : vector<8x1xi1> to vector<8x4xi1>
    %31 = vector.shape_cast %26 : vector<1x4xf32> to vector<1x4xf32>
    %32 = vector.broadcast %31 : vector<1x4xf32> to vector<8x4xf32>
    %33 = arith.select %30, %32, %25 : vector<8x4xi1>, vector<8x4xf32>
    %c4 = arith.constant 4 : index
    %c0_6 = arith.constant 0 : index
    %34 = vector.load %arg1[%c4, %c0_6] : memref<10x4xf32, #tpu.memory_space<vmem>>, vector<1x4xf32>
    %c4_i32 = arith.constant 4 : i32
    %35 = vector.broadcast %c4_i32 : i32 to vector<8x1xi32>
    %36 = arith.cmpi eq, %0, %35 : vector<8x1xi32>
    %37 = vector.shape_cast %36 : vector<8x1xi1> to vector<8x1xi1>
    %38 = vector.broadcast %37 : vector<8x1xi1> to vector<8x4xi1>
    %39 = vector.shape_cast %34 : vector<1x4xf32> to vector<1x4xf32>
    %40 = vector.broadcast %39 : vector<1x4xf32> to vector<8x4xf32>
    %41 = arith.select %38, %40, %33 : vector<8x4xi1>, vector<8x4xf32>
    %c5 = arith.constant 5 : index
    %c0_7 = arith.constant 0 : index
    %42 = vector.load %arg1[%c5, %c0_7] : memref<10x4xf32, #tpu.memory_space<vmem>>, vector<1x4xf32>
    %c5_i32 = arith.constant 5 : i32
    %43 = vector.broadcast %c5_i32 : i32 to vector<8x1xi32>
    %44 = arith.cmpi eq, %0, %43 : vector<8x1xi32>
    %45 = vector.shape_cast %44 : vector<8x1xi1> to vector<8x1xi1>
    %46 = vector.broadcast %45 : vector<8x1xi1> to vector<8x4xi1>
    %47 = vector.shape_cast %42 : vector<1x4xf32> to vector<1x4xf32>
    %48 = vector.broadcast %47 : vector<1x4xf32> to vector<8x4xf32>
    %49 = arith.select %46, %48, %41 : vector<8x4xi1>, vector<8x4xf32>
    %c6 = arith.constant 6 : index
    %c0_8 = arith.constant 0 : index
    %50 = vector.load %arg1[%c6, %c0_8] : memref<10x4xf32, #tpu.memory_space<vmem>>, vector<1x4xf32>
    %c6_i32 = arith.constant 6 : i32
    %51 = vector.broadcast %c6_i32 : i32 to vector<8x1xi32>
    %52 = arith.cmpi eq, %0, %51 : vector<8x1xi32>
    %53 = vector.shape_cast %52 : vector<8x1xi1> to vector<8x1xi1>
    %54 = vector.broadcast %53 : vector<8x1xi1> to vector<8x4xi1>
    %55 = vector.shape_cast %50 : vector<1x4xf32> to vector<1x4xf32>
    %56 = vector.broadcast %55 : vector<1x4xf32> to vector<8x4xf32>
    %57 = arith.select %54, %56, %49 : vector<8x4xi1>, vector<8x4xf32>
    %c7 = arith.constant 7 : index
    %c0_9 = arith.constant 0 : index
    %58 = vector.load %arg1[%c7, %c0_9] : memref<10x4xf32, #tpu.memory_space<vmem>>, vector<1x4xf32>
    %c7_i32 = arith.constant 7 : i32
    %59 = vector.broadcast %c7_i32 : i32 to vector<8x1xi32>
    %60 = arith.cmpi eq, %0, %59 : vector<8x1xi32>
    %61 = vector.shape_cast %60 : vector<8x1xi1> to vector<8x1xi1>
    %62 = vector.broadcast %61 : vector<8x1xi1> to vector<8x4xi1>
    %63 = vector.shape_cast %58 : vector<1x4xf32> to vector<1x4xf32>
    %64 = vector.broadcast %63 : vector<1x4xf32> to vector<8x4xf32>
    %65 = arith.select %62, %64, %57 : vector<8x4xi1>, vector<8x4xf32>
    %c8 = arith.constant 8 : index
    %c0_10 = arith.constant 0 : index
    %66 = vector.load %arg1[%c8, %c0_10] : memref<10x4xf32, #tpu.memory_space<vmem>>, vector<1x4xf32>
    %c8_i32 = arith.constant 8 : i32
    %67 = vector.broadcast %c8_i32 : i32 to vector<8x1xi32>
    %68 = arith.cmpi eq, %0, %67 : vector<8x1xi32>
    %69 = vector.shape_cast %68 : vector<8x1xi1> to vector<8x1xi1>
    %70 = vector.broadcast %69 : vector<8x1xi1> to vector<8x4xi1>
    %71 = vector.shape_cast %66 : vector<1x4xf32> to vector<1x4xf32>
    %72 = vector.broadcast %71 : vector<1x4xf32> to vector<8x4xf32>
    %73 = arith.select %70, %72, %65 : vector<8x4xi1>, vector<8x4xf32>
    %c9 = arith.constant 9 : index
    %c0_11 = arith.constant 0 : index
    %74 = vector.load %arg1[%c9, %c0_11] : memref<10x4xf32, #tpu.memory_space<vmem>>, vector<1x4xf32>
    %c9_i32 = arith.constant 9 : i32
    %75 = vector.broadcast %c9_i32 : i32 to vector<8x1xi32>
    %76 = arith.cmpi eq, %0, %75 : vector<8x1xi32>
    %77 = vector.shape_cast %76 : vector<8x1xi1> to vector<8x1xi1>
    %78 = vector.broadcast %77 : vector<8x1xi1> to vector<8x4xi1>
    %79 = vector.shape_cast %74 : vector<1x4xf32> to vector<1x4xf32>
    %80 = vector.broadcast %79 : vector<1x4xf32> to vector<8x4xf32>
    %81 = arith.select %78, %80, %73 : vector<8x4xi1>, vector<8x4xf32>
    %c0_12 = arith.constant 0 : index
    %c0_13 = arith.constant 0 : index
    %82 = vector.load %arg2[%c0_12, %c0_13] : memref<8x4xf32, #tpu.memory_space<vmem>>, vector<8x4xf32>
    tpu.vector_store %arg2[%c0_12, %c0_13], %81 {strides = array<i32>} : memref<8x4xf32, #tpu.memory_space<vmem>>, vector<8x4xf32>,
    return
  }
}

</mosaic_0001>

<bundles_post_ra>
// kernel: tpu_custom_call.1
= control target key start
LH: loop header
LB: loop body
LE: loop exit
PB: predicated region body
PF: predicated region fallthrough
CT: control target
= control target key end

     0   :  { %v122_v0 = vmov 0   ;;  %s174_s0 = inlined_call_operand.vmem [shape: s32[8,1], index: 0, kind: input, shape index: {}]   ;;  %s175_s1 = inlined_call_operand.vmem [shape: f32[10,4], index: 1, kind: input, shape index: {}]   ;;  %s176_s2 = inlined_call_operand.vmem [shape: f32[8,4], index: 2, kind: output, shape index: {}]  }
   0x1   :  { %110 = vset.pattern.permute.xlu1 %v122_v0  ;;  %109 = vset.pattern.permute.xlu0 %v122_v0  ;;  %v11_v1 = vld [vmem:[%s174_s0] sm:$0xff]  ;;  %v120_v36 = vld [vmem:[%s175_s1 + $0x8] ss:$0 sm:$0xff]  ;;  %v121_v38 = vld [vmem:[%s175_s1 + $0x9] ss:$0 sm:$0xff] }
   0x2   :  { %vm31_vm0 = vcmp.eq.s32.totalorder %v11_v1, 2  ;;  %vm13_vm1 = vcmp.eq.s32.totalorder %v11_v1, 0  ;;  %111 = vset.pattern.permute.xlu2 %v122_v0  ;;  %vm49_vm2 = vcmp.eq.s32.totalorder %v11_v1, 4  ;;  %vm40_vm3 = vcmp.eq.s32.totalorder %v11_v1, 3  ;;  %v112_v15 = vld [vmem:[%s175_s1] ss:$0 sm:$0xff] }
   0x3   :  { %v32_v2 = vsel %vm31_vm0, 1, %v122_v0  ;;  %v14_v3 = vsel %vm13_vm1, 1, %v122_v0  ;;  %v50_v4 = vsel %vm49_vm2, 1, %v122_v0  ;;  %vm22_vm4 = vcmp.eq.s32.totalorder %v11_v1, 1  ;;  %v113_v16 = vld [vmem:[%s175_s1 + $0x1] ss:$0 sm:$0xff] }
   0x4   :  { %34 = vperm.xlu1 %110, %v32_v2   ;;  %16 = vperm.xlu0 %109, %v14_v3   ;;  %vm58_vm5 = vcmp.eq.s32.totalorder %v11_v1, 5  ;;  %v41_v5 = vsel %vm40_vm3, 1, %v122_v0  ;;  %v23_v6 = vsel %vm22_vm4, 1, %v122_v0  ;;  %vm76_vm6 = vcmp.eq.s32.totalorder %v11_v1, 7  ;;  %v114_v17 = vld [vmem:[%s175_s1 + $0x2] ss:$0 sm:$0xff] }
   0x5   :  { %52 = vperm.xlu2 %111, %v50_v4   ;;  %v59_v7 = vsel %vm58_vm5, 1, %v122_v0  ;;  %vm67_vm7 = vcmp.eq.s32.totalorder %v11_v1, 6  ;;  %vm85_vm8 = vcmp.eq.s32.totalorder %v11_v1, 8  ;;  %v77_v8 = vsel %vm76_vm6, 1, %v122_v0  ;;  %v115_v19 = vld [vmem:[%s175_s1 + $0x3] ss:$0 sm:$0xff] }
   0x6   :  { %v68_v9 = vsel %vm67_vm7, 1, %v122_v0  ;;  %v86_v10 = vsel %vm85_vm8, 1, %v122_v0  ;;  %vm94_vm9 = vcmp.eq.s32.totalorder %v11_v1, 9  ;;  %v116_v25 = vld [vmem:[%s175_s1 + $0x4] ss:$0 sm:$0xff]  ;;  %vm102_vm3 = vcmask 31744  }
   0x7   :  { %v95_v11 = vsel %vm94_vm9, 1, %v122_v0  ;;  %v117_v27 = vld [vmem:[%s175_s1 + $0x5] ss:$0 sm:$0xff]  ;;  %v118_v29 = vld [vmem:[%s175_s1 + $0x6] ss:$0 sm:$0xff] }
   0x8   :  { %v119_v33 = vld [vmem:[%s175_s1 + $0x7] ss:$0 sm:$0xff] }
   0xc   :  { %43 = vperm.xlu1 %110, %v41_v5   ;;  %25 = vperm.xlu0 %109, %v23_v6  }
   0xd   :  { %61 = vperm.xlu2 %111, %v59_v7  }
  0x14   :  { %79 = vperm.xlu1 %110, %v77_v8   ;;  %70 = vperm.xlu0 %109, %v68_v9  }
  0x15   :  { %88 = vperm.xlu2 %111, %v86_v10  }
  0x1c   :  { %97 = vperm.xlu0 %109, %v95_v11  }
  0x5f   :  { %v53_v14 = vpop.permute.xlu2 %52 }
  0x60   :  { %vm54_vm14 = vcmp.eq.s32.totalorder %v53_v14, 1 }
  0x67   :  { %v62_v23 = vpop.permute.xlu2 %61 }
  0x68   :  { %vm63_vm15 = vcmp.eq.s32.totalorder %v62_v23, 1 }
  0x6f   :  { %v89_v35 = vpop.permute.xlu2 %88 }
  0x70   :  { %vm90_vm2 = vcmp.eq.s32.totalorder %v89_v35, 1 }
  0x76   :  { %v35_v12 = vpop.permute.xlu1 %34  ;;  %v17_v13 = vpop.permute.xlu0 %16 }
  0x77   :  { %vm18_vm10 = vcmp.eq.s32.totalorder %v17_v13, 1  ;;  %vm36_vm12 = vcmp.eq.s32.totalorder %v35_v12, 1 }
  0x78   :  { %v20_v21 = vsel %vm18_vm10, %v112_v15, 0.0 }
  0x7e   :  { %v44_v18 = vpop.permute.xlu1 %43  ;;  %v26_v20 = vpop.permute.xlu0 %25 }
  0x7f   :  { %vm27_vm11 = vcmp.eq.s32.totalorder %v26_v20, 1  ;;  %vm45_vm13 = vcmp.eq.s32.totalorder %v44_v18, 1 }
  0x80   :  { %v29_v22 = vsel %vm27_vm11, %v113_v16, %v20_v21 }
  0x81   :  { %v38_v24 = vsel %vm36_vm12, %v114_v17, %v29_v22 }
  0x82   :  { %v47_v26 = vsel %vm45_vm13, %v115_v19, %v38_v24 }
  0x83   :  { %v56_v28 = vsel %vm54_vm14, %v116_v25, %v47_v26 }
  0x84   :  { %v65_v32 = vsel %vm63_vm15, %v117_v27, %v56_v28 }
  0x86   :  { %v80_v30 = vpop.permute.xlu1 %79  ;;  %v71_v31 = vpop.permute.xlu0 %70 }
  0x87   :  { %vm72_vm0 = vcmp.eq.s32.totalorder %v71_v31, 1  ;;  %vm81_vm1 = vcmp.eq.s32.totalorder %v80_v30, 1 }
  0x88   :  { %v74_v34 = vsel %vm72_vm0, %v118_v29, %v65_v32 }
  0x89   :  { %v83_v37 = vsel %vm81_vm1, %v119_v33, %v74_v34 }
  0x8a   :  { %v92_v40 = vsel %vm90_vm2, %v120_v36, %v83_v37 }
  0x8e   :  { %v98_v39 = vpop.permute.xlu0 %97 }
  0x8f   :  { %vm99_vm4 = vcmp.eq.s32.totalorder %v98_v39, 1 }
  0x90   :  { %v101_v41 = vsel %vm99_vm4, %v121_v38, %v92_v40 }
  0x91   :  { %103 = vst.msk [vmem:[%s176_s2] sm:$0xff] %vm102_vm3, %v101_v41 }

</bundles_post_ra>
